<compile_context>
chip_gen: v6e
topology: v6e:2x2x1
jax: 0.10.0
libtpu: 0.0.40
codegen_flags: <defaults>
</compile_context>

<pallas_src>
import jax
import jax.numpy as jnp
from jax.experimental import pallas as pl
from jax.experimental.pallas import tpu as pltpu


_LANE = 128                  # lane width: resident hidden dim is padded to this
_ACT_VMEM_BUDGET = 8 << 20   # budget for live f32 activations per row tile (bytes)


def _round_up(x, m):
    return (x + m - 1) // m * m


def _mlp_kernel(x_ref, w1_ref, b1_ref, w2_ref, b2_ref, w3_ref, b3_ref, o_ref):
    # x_ref: (tm, D_in)   w1: (D_in, Hp)  b1: (1, Hp)
    # w2: (Hp, Hp) b2: (1, Hp)   w3: (Hp, D_out) b3: (1, D_out)   o_ref: (tm, D_out)
    #
    # Cast the activation tile to the (pre-cast) weight dtype inside the kernel, so x
    # stays f32 in HBM and there is no wrapper-side cast pass.
    x = x_ref[...].astype(w1_ref.dtype)

    # Layer 1: MXU matmul with f32 accumulation, bias-add + ReLU on the VPU in f32.
    h = jnp.dot(x, w1_ref[...], preferred_element_type=jnp.float32) + b1_ref[...]
    h = jnp.maximum(h, 0.0)

    # Layer 2.
    h = jnp.dot(h.astype(w2_ref.dtype), w2_ref[...],
                preferred_element_type=jnp.float32) + b2_ref[...]
    h = jnp.maximum(h, 0.0)

    # Layer 3 (+ final ReLU, matching the PyTorch Sequential).
    h = jnp.dot(h.astype(w3_ref.dtype), w3_ref[...],
                preferred_element_type=jnp.float32) + b3_ref[...]
    h = jnp.maximum(h, 0.0)

    o_ref[...] = h.astype(o_ref.dtype)


def prepare_relation_encoder_params(params, mxu_dtype=jnp.bfloat16):
    """One-time weight preparation (call at load time, reuse across forward calls).

    Pads the hidden dim H up to a multiple of 128 (numerically exact for Linear+ReLU:
    zero rows/cols contribute nothing, ReLU(0)=0) and casts the matmul operands to
    `mxu_dtype` (bf16 default for MXU throughput + halved resident bytes; pass
    jnp.float32 for the exact path).  Biases stay f32 (VPU work is f32 everywhere).
    """
    w1, b1, w2, b2, w3, b3 = params
    D_in, H = w1.shape
    D_out = w3.shape[1]
    Hp = _round_up(H, _LANE)
    ph = Hp - H

    w1p = jnp.pad(w1, ((0, 0), (0, ph))).astype(mxu_dtype)
    w2p = jnp.pad(w2, ((0, ph), (0, ph))).astype(mxu_dtype)
    w3p = jnp.pad(w3, ((0, ph), (0, 0))).astype(mxu_dtype)
    b1p = jnp.pad(jnp.asarray(b1), (0, ph)).reshape(1, Hp).astype(jnp.float32)
    b2p = jnp.pad(jnp.asarray(b2), (0, ph)).reshape(1, Hp).astype(jnp.float32)
    b3p = jnp.asarray(b3).reshape(1, D_out).astype(jnp.float32)

    return {
        "w1": w1p, "b1": b1p, "w2": w2p, "b2": b2p, "w3": w3p, "b3": b3p,
        "dims": (D_in, H, D_out, Hp),
        "mxu_dtype": jnp.dtype(mxu_dtype),
    }


def _default_num_cores():
    # v7x has 2 TensorCores per chip; give the grid >= 2 steps there so the
    # "parallel" dimension semantics can shard it.  v5e/v6e have 1 TC.
    try:
        kind = jax.devices()[0].device_kind.lower()
    except Exception:
        return 1
    return 2 if "v7" in kind else 1


def relation_encoder_forward(x, prepared, *, tm=None, num_cores=None):
    """x: [B, N, D_in] -> [B, N, D_out].  `prepared` = prepare_relation_encoder_params()."""
    D_in, _H, D_out, Hp = prepared["dims"]
    B, N, d_in_x = x.shape
    assert d_in_x == D_in, f"input feature dim {d_in_x} != weight fan-in {D_in}"
    M = B * N
    x2d = x.reshape(M, D_in)

    w1p, b1p = prepared["w1"], prepared["b1"]
    w2p, b2p = prepared["w2"], prepared["b2"]
    w3p, b3p = prepared["w3"], prepared["b3"]
    op_itemsize = prepared["mxu_dtype"].itemsize

    if num_cores is None:
        num_cores = _default_num_cores()

    # Row tile: multiple of 16 for 16-bit MXU operands (2 rows pack per sublane),
    # else 8.  Split across cores (v7x), cap at 1024 rows and by the activation
    # VMEM budget (~two live (tm, Hp) f32 tiles).
    sub = 16 if op_itemsize == 2 else 8
    if tm is None:
        tm = min(_round_up(pl.cdiv(M, num_cores), sub), 1024)
        act_cap = max(sub, (_ACT_VMEM_BUDGET // (2 * Hp * 4)) // sub * sub)
        tm = min(tm, act_cap)
    tm = max(sub, _round_up(tm, sub))
    grid = (pl.cdiv(M, tm),)   # no row padding; Pallas masks the overhanging block

    out_dtype = x.dtype

    # Advisory cost estimate (true streamed HBM bytes, un-padded rows/features).
    flops = 2 * M * (D_in * Hp + Hp * Hp + Hp * D_out)
    weight_bytes = sum(a.size * a.dtype.itemsize
                       for a in (w1p, b1p, w2p, b2p, w3p, b3p))
    bytes_accessed = (x2d.size * x2d.dtype.itemsize + weight_bytes
                      + M * D_out * jnp.dtype(out_dtype).itemsize)
    cost = pl.CostEstimate(flops=flops, transcendentals=0,
                           bytes_accessed=bytes_accessed)

    # Explicit VMEM budget (v5e's default scoped limit is only 16 MiB).
    est_vmem = (
        weight_bytes                                      # resident weights/biases
        + 2 * tm * D_in * x2d.dtype.itemsize              # double-buffered x tile
        + 2 * tm * D_out * jnp.dtype(out_dtype).itemsize  # double-buffered out tile
        + 3 * tm * Hp * 4                                 # live f32 activations
    )
    vmem_limit = int(min(max(2 * est_vmem, 32 << 20), 100 << 20))

    def _call(single_buffer_weights):
        def _resident_spec(shape):
            # Constant index_map => never re-fetched across grid steps; single-buffer
            # to halve the resident VMEM of the weight tiles when supported.
            if single_buffer_weights and hasattr(pl, "Buffered"):
                return pl.BlockSpec(shape, lambda i: (0, 0),
                                    pipeline_mode=pl.Buffered(1))
            return pl.BlockSpec(shape, lambda i: (0, 0))

        return pl.pallas_call(
            _mlp_kernel,
            out_shape=jax.ShapeDtypeStruct((M, D_out), out_dtype),
            grid_spec=pltpu.PrefetchScalarGridSpec(
                num_scalar_prefetch=0,
                grid=grid,
                in_specs=[
                    pl.BlockSpec((tm, D_in), lambda i: (i, 0)),  # x row tile (true width)
                    _resident_spec((D_in, Hp)),                  # w1
                    _resident_spec((1, Hp)),                     # b1
                    _resident_spec((Hp, Hp)),                    # w2
                    _resident_spec((1, Hp)),                     # b2
                    _resident_spec((Hp, D_out)),                 # w3
                    _resident_spec((1, D_out)),                  # b3
                ],
                out_specs=pl.BlockSpec((tm, D_out), lambda i: (i, 0)),
            ),
            compiler_params=pltpu.CompilerParams(
                dimension_semantics=("parallel",),
                vmem_limit_bytes=vmem_limit),
            cost_estimate=cost,
        )(x2d, w1p, b1p, w2p, b2p, w3p, b3p)

    try:
        out2d = _call(True)
    except Exception:
        # Older Pallas without pipeline_mode / Buffered(1) support on this path:
        # fall back to default double-buffered weight tiles (correctness unchanged).
        out2d = _call(False)

    return out2d.reshape(B, N, D_out)


def init_relation_encoder_params(key, input_size, hidden_size, output_size,
                                 dtype=jnp.float32):
    """Deterministic init matching nn.Linear's default (uniform +/- 1/sqrt(fan_in))."""
    ks = jax.random.split(key, 6)

    def linear(kw, kb, fan_in, fan_out):
        bound = 1.0 / jnp.sqrt(fan_in)
        w = jax.random.uniform(kw, (fan_in, fan_out), dtype, -bound, bound)
        b = jax.random.uniform(kb, (fan_out,), dtype, -bound, bound)
        return w, b

    w1, b1 = linear(ks[0], ks[1], input_size, hidden_size)
    w2, b2 = linear(ks[2], ks[3], hidden_size, hidden_size)
    w3, b3 = linear(ks[4], ks[5], hidden_size, output_size)
    return (w1, b1, w2, b2, w3, b3)


def relation_encoder_ref(x, params):
    """Pure-JAX reference (matches the PyTorch forward, including the final ReLU)."""
    w1, b1, w2, b2, w3, b3 = params
    B, N, D = x.shape
    h = x.reshape(B * N, D)
    h = jnp.maximum(h @ w1 + b1, 0.0)
    h = jnp.maximum(h @ w2 + b2, 0.0)
    h = jnp.maximum(h @ w3 + b3, 0.0)
    return h.reshape(B, N, w3.shape[1])


if __name__ == "__main__":
    # Small shapes consistent with RelationEncoder.forward:
    #   x: [batch_size=2, n_relations=64, input_size=32], hidden=64, output=32
    B, N = 2, 64
    input_size, hidden_size, output_size = 32, 64, 32

    key = jax.random.PRNGKey(0)
    k_x, k_p = jax.random.split(key)

    x = jax.random.normal(k_x, (B, N, input_size), dtype=jnp.float32)
    params = init_relation_encoder_params(k_p, input_size, hidden_size, output_size)
    ref = relation_encoder_ref(x, params)

    # Exact path: f32 MXU operands (tight tolerance vs. the JAX reference).
    prep_f32 = prepare_relation_encoder_params(params, mxu_dtype=jnp.float32)
    out_f32 = jax.block_until_ready(relation_encoder_forward(x, prep_f32))
    assert out_f32.shape == (B, N, output_size)
    assert jnp.allclose(out_f32, ref, atol=1e-5, rtol=1e-5), "f32 path mismatch"

    # Production default path: bf16 MXU operands (weights pre-cast once at prepare
    # time, activations cast in-kernel), f32 accumulation / bias / ReLU.
    prep_bf16 = prepare_relation_encoder_params(params)  # bf16 default
    out_bf16 = jax.block_until_ready(relation_encoder_forward(x, prep_bf16))
    assert out_bf16.shape == (B, N, output_size)
    max_err = jnp.max(jnp.abs(out_bf16 - ref))
    assert bool(jnp.isfinite(max_err)) and float(max_err) < 1e-1, \
        f"bf16 path error too large: {max_err}"

    print("KERNEL_OK")
</pallas_src>

<mosaic_0001>
module attributes {stable_mosaic.version = 11 : i64} {
  func.func @_mlp_kernel(%arg0: i32, %arg1: memref<128x32xf32, #tpu.memory_space<vmem>>, %arg2: memref<32x128xf32, #tpu.memory_space<vmem>>, %arg3: memref<1x128xf32, #tpu.memory_space<vmem>>, %arg4: memref<128x128xf32, #tpu.memory_space<vmem>>, %arg5: memref<1x128xf32, #tpu.memory_space<vmem>>, %arg6: memref<128x32xf32, #tpu.memory_space<vmem>>, %arg7: memref<1x32xf32, #tpu.memory_space<vmem>>, %arg8: memref<128x32xf32, #tpu.memory_space<vmem>>) attributes {dimension_semantics = [#tpu.dimension_semantics<parallel>], iteration_bounds = array<i64: 1>, scalar_prefetch = 0 : i64, scratch_operands = 0 : i64, tpu.core_type = #tpu.core_type<tc>, window_params = [{transform_indices = @transform_0, window_bounds = array<i64: 128, 32>}, {pipeline_mode = #tpu.pipeline_mode<synchronous>, transform_indices = @transform_1, window_bounds = array<i64: 32, 128>}, {pipeline_mode = #tpu.pipeline_mode<synchronous>, transform_indices = @transform_2, window_bounds = array<i64: 1, 128>}, {pipeline_mode = #tpu.pipeline_mode<synchronous>, transform_indices = @transform_3, window_bounds = array<i64: 128, 128>}, {pipeline_mode = #tpu.pipeline_mode<synchronous>, transform_indices = @transform_4, window_bounds = array<i64: 1, 128>}, {pipeline_mode = #tpu.pipeline_mode<synchronous>, transform_indices = @transform_5, window_bounds = array<i64: 128, 32>}, {pipeline_mode = #tpu.pipeline_mode<synchronous>, transform_indices = @transform_6, window_bounds = array<i64: 1, 32>}, {transform_indices = @transform_7, window_bounds = array<i64: 128, 32>}]} {
    %c0 = arith.constant 0 : index
    %c0_0 = arith.constant 0 : index
    %0 = vector.load %arg1[%c0, %c0_0] : memref<128x32xf32, #tpu.memory_space<vmem>>, vector<128x32xf32>
    %c0_1 = arith.constant 0 : index
    %c0_2 = arith.constant 0 : index
    %1 = vector.load %arg2[%c0_1, %c0_2] : memref<32x128xf32, #tpu.memory_space<vmem>>, vector<32x128xf32>
    %cst = arith.constant dense<0.000000e+00> : vector<128x128xf32>
    %2 = tpu.matmul %0, %1, %cst {dimension_numbers = #tpu.dot_dimension_numbers<[1], [0], [0], [1], [0, 0, 1, 1], [], []>} : vector<128x32xf32>, vector<32x128xf32>, vector<128x128xf32> -> vector<128x128xf32>
    %c0_3 = arith.constant 0 : index
    %c0_4 = arith.constant 0 : index
    %3 = vector.load %arg3[%c0_3, %c0_4] : memref<1x128xf32, #tpu.memory_space<vmem>>, vector<1x128xf32>
    %4 = vector.broadcast %3 : vector<1x128xf32> to vector<128x128xf32>
    %5 = arith.addf %2, %4 : vector<128x128xf32>
    %cst_5 = arith.constant 0.000000e+00 : f32
    %6 = vector.broadcast %cst_5 : f32 to vector<128x128xf32>
    %7 = arith.maximumf %5, %6 : vector<128x128xf32>
    %c0_6 = arith.constant 0 : index
    %c0_7 = arith.constant 0 : index
    %8 = vector.load %arg4[%c0_6, %c0_7] : memref<128x128xf32, #tpu.memory_space<vmem>>, vector<128x128xf32>
    %cst_8 = arith.constant dense<0.000000e+00> : vector<128x128xf32>
    %9 = tpu.matmul %7, %8, %cst_8 {dimension_numbers = #tpu.dot_dimension_numbers<[1], [0], [0], [1], [0, 0, 1, 1], [], []>} : vector<128x128xf32>, vector<128x128xf32>, vector<128x128xf32> -> vector<128x128xf32>
    %c0_9 = arith.constant 0 : index
    %c0_10 = arith.constant 0 : index
    %10 = vector.load %arg5[%c0_9, %c0_10] : memref<1x128xf32, #tpu.memory_space<vmem>>, vector<1x128xf32>
    %11 = vector.broadcast %10 : vector<1x128xf32> to vector<128x128xf32>
    %12 = arith.addf %9, %11 : vector<128x128xf32>
    %cst_11 = arith.constant 0.000000e+00 : f32
    %13 = vector.broadcast %cst_11 : f32 to vector<128x128xf32>
    %14 = arith.maximumf %12, %13 : vector<128x128xf32>
    %c0_12 = arith.constant 0 : index
    %c0_13 = arith.constant 0 : index
    %15 = vector.load %arg6[%c0_12, %c0_13] : memref<128x32xf32, #tpu.memory_space<vmem>>, vector<128x32xf32>
    %cst_14 = arith.constant dense<0.000000e+00> : vector<128x32xf32>
    %16 = tpu.matmul %14, %15, %cst_14 {dimension_numbers = #tpu.dot_dimension_numbers<[1], [0], [0], [1], [0, 0, 1, 1], [], []>} : vector<128x128xf32>, vector<128x32xf32>, vector<128x32xf32> -> vector<128x32xf32>
    %c0_15 = arith.constant 0 : index
    %c0_16 = arith.constant 0 : index
    %17 = vector.load %arg7[%c0_15, %c0_16] : memref<1x32xf32, #tpu.memory_space<vmem>>, vector<1x32xf32>
    %18 = vector.broadcast %17 : vector<1x32xf32> to vector<128x32xf32>
    %19 = arith.addf %16, %18 : vector<128x32xf32>
    %cst_17 = arith.constant 0.000000e+00 : f32
    %20 = vector.broadcast %cst_17 : f32 to vector<128x32xf32>
    %21 = arith.maximumf %19, %20 : vector<128x32xf32>
    %c0_18 = arith.constant 0 : index
    %c0_19 = arith.constant 0 : index
    %22 = vector.load %arg8[%c0_18, %c0_19] : memref<128x32xf32, #tpu.memory_space<vmem>>, vector<128x32xf32>
    tpu.vector_store %arg8[%c0_18, %c0_19], %21 {strides = array<i32>} : memref<128x32xf32, #tpu.memory_space<vmem>>, vector<128x32xf32>,
    return
  }
  func.func @transform_0(%arg0: i32) -> (i32, i32) {
    %c0_i32 = arith.constant 0 : i32
    %c0_i32_0 = arith.constant 0 : i32
    return %arg0, %c0_i32 : i32, i32
  }
  func.func @transform_1(%arg0: i32) -> (i32, i32) {
    %c0_i32 = arith.constant 0 : i32
    %c0_i32_0 = arith.constant 0 : i32
    %c0_i32_1 = arith.constant 0 : i32
    return %c0_i32, %c0_i32_0 : i32, i32
  }
  func.func @transform_2(%arg0: i32) -> (i32, i32) {
    %c0_i32 = arith.constant 0 : i32
    %c0_i32_0 = arith.constant 0 : i32
    %c0_i32_1 = arith.constant 0 : i32
    return %c0_i32, %c0_i32_0 : i32, i32
  }
  func.func @transform_3(%arg0: i32) -> (i32, i32) {
    %c0_i32 = arith.constant 0 : i32
    %c0_i32_0 = arith.constant 0 : i32
    %c0_i32_1 = arith.constant 0 : i32
    return %c0_i32, %c0_i32_0 : i32, i32
  }
  func.func @transform_4(%arg0: i32) -> (i32, i32) {
    %c0_i32 = arith.constant 0 : i32
    %c0_i32_0 = arith.constant 0 : i32
    %c0_i32_1 = arith.constant 0 : i32
    return %c0_i32, %c0_i32_0 : i32, i32
  }
  func.func @transform_5(%arg0: i32) -> (i32, i32) {
    %c0_i32 = arith.constant 0 : i32
    %c0_i32_0 = arith.constant 0 : i32
    %c0_i32_1 = arith.constant 0 : i32
    return %c0_i32, %c0_i32_0 : i32, i32
  }
  func.func @transform_6(%arg0: i32) -> (i32, i32) {
    %c0_i32 = arith.constant 0 : i32
    %c0_i32_0 = arith.constant 0 : i32
    %c0_i32_1 = arith.constant 0 : i32
    return %c0_i32, %c0_i32_0 : i32, i32
  }
  func.func @transform_7(%arg0: i32) -> (i32, i32) {
    %c0_i32 = arith.constant 0 : i32
    %c0_i32_0 = arith.constant 0 : i32
    return %arg0, %c0_i32 : i32, i32
  }
}

module attributes {stable_mosaic.version = 11 : i64} {
  func.func @_mlp_kernel(%arg0: i32, %arg1: memref<128x32xf32, #tpu.memory_space<vmem>>, %arg2: memref<32x128xf32, #tpu.memory_space<vmem>>, %arg3: memref<1x128xf32, #tpu.memory_space<vmem>>, %arg4: memref<128x128xf32, #tpu.memory_space<vmem>>, %arg5: memref<1x128xf32, #tpu.memory_space<vmem>>, %arg6: memref<128x32xf32, #tpu.memory_space<vmem>>, %arg7: memref<1x32xf32, #tpu.memory_space<vmem>>, %arg8: memref<128x32xf32, #tpu.memory_space<vmem>>) attributes {dimension_semantics = [#tpu.dimension_semantics<parallel>], iteration_bounds = array<i64: 1>, scalar_prefetch = 0 : i64, scratch_operands = 0 : i64, tpu.core_type = #tpu.core_type<tc>, window_params = [{transform_indices = @transform_0, window_bounds = array<i64: 128, 32>}, {pipeline_mode = #tpu.pipeline_mode<synchronous>, transform_indices = @transform_1, window_bounds = array<i64: 32, 128>}, {pipeline_mode = #tpu.pipeline_mode<synchronous>, transform_indices = @transform_2, window_bounds = array<i64: 1, 128>}, {pipeline_mode = #tpu.pipeline_mode<synchronous>, transform_indices = @transform_3, window_bounds = array<i64: 128, 128>}, {pipeline_mode = #tpu.pipeline_mode<synchronous>, transform_indices = @transform_4, window_bounds = array<i64: 1, 128>}, {pipeline_mode = #tpu.pipeline_mode<synchronous>, transform_indices = @transform_5, window_bounds = array<i64: 128, 32>}, {pipeline_mode = #tpu.pipeline_mode<synchronous>, transform_indices = @transform_6, window_bounds = array<i64: 1, 32>}, {transform_indices = @transform_7, window_bounds = array<i64: 128, 32>}]} {
    %c0 = arith.constant 0 : index
    %c0_0 = arith.constant 0 : index
    %0 = vector.load %arg1[%c0, %c0_0] : memref<128x32xf32, #tpu.memory_space<vmem>>, vector<128x32xf32>
    %c0_1 = arith.constant 0 : index
    %c0_2 = arith.constant 0 : index
    %1 = vector.load %arg2[%c0_1, %c0_2] : memref<32x128xf32, #tpu.memory_space<vmem>>, vector<32x128xf32>
    %cst = arith.constant dense<0.000000e+00> : vector<128x128xf32>
    %2 = tpu.matmul %0, %1, %cst {dimension_numbers = #tpu.dot_dimension_numbers<[1], [0], [0], [1], [0, 0, 1, 1], [], []>} : vector<128x32xf32>, vector<32x128xf32>, vector<128x128xf32> -> vector<128x128xf32>
    %c0_3 = arith.constant 0 : index
    %c0_4 = arith.constant 0 : index
    %3 = vector.load %arg3[%c0_3, %c0_4] : memref<1x128xf32, #tpu.memory_space<vmem>>, vector<1x128xf32>
    %4 = vector.broadcast %3 : vector<1x128xf32> to vector<128x128xf32>
    %5 = arith.addf %2, %4 : vector<128x128xf32>
    %cst_5 = arith.constant 0.000000e+00 : f32
    %6 = vector.broadcast %cst_5 : f32 to vector<128x128xf32>
    %7 = arith.maximumf %5, %6 : vector<128x128xf32>
    %c0_6 = arith.constant 0 : index
    %c0_7 = arith.constant 0 : index
    %8 = vector.load %arg4[%c0_6, %c0_7] : memref<128x128xf32, #tpu.memory_space<vmem>>, vector<128x128xf32>
    %cst_8 = arith.constant dense<0.000000e+00> : vector<128x128xf32>
    %9 = tpu.matmul %7, %8, %cst_8 {dimension_numbers = #tpu.dot_dimension_numbers<[1], [0], [0], [1], [0, 0, 1, 1], [], []>} : vector<128x128xf32>, vector<128x128xf32>, vector<128x128xf32> -> vector<128x128xf32>
    %c0_9 = arith.constant 0 : index
    %c0_10 = arith.constant 0 : index
    %10 = vector.load %arg5[%c0_9, %c0_10] : memref<1x128xf32, #tpu.memory_space<vmem>>, vector<1x128xf32>
    %11 = vector.broadcast %10 : vector<1x128xf32> to vector<128x128xf32>
    %12 = arith.addf %9, %11 : vector<128x128xf32>
    %cst_11 = arith.constant 0.000000e+00 : f32
    %13 = vector.broadcast %cst_11 : f32 to vector<128x128xf32>
    %14 = arith.maximumf %12, %13 : vector<128x128xf32>
    %c0_12 = arith.constant 0 : index
    %c0_13 = arith.constant 0 : index
    %15 = vector.load %arg6[%c0_12, %c0_13] : memref<128x32xf32, #tpu.memory_space<vmem>>, vector<128x32xf32>
    %cst_14 = arith.constant dense<0.000000e+00> : vector<128x32xf32>
    %16 = tpu.matmul %14, %15, %cst_14 {dimension_numbers = #tpu.dot_dimension_numbers<[1], [0], [0], [1], [0, 0, 1, 1], [], []>} : vector<128x128xf32>, vector<128x32xf32>, vector<128x32xf32> -> vector<128x32xf32>
    %c0_15 = arith.constant 0 : index
    %c0_16 = arith.constant 0 : index
    %17 = vector.load %arg7[%c0_15, %c0_16] : memref<1x32xf32, #tpu.memory_space<vmem>>, vector<1x32xf32>
    %18 = vector.broadcast %17 : vector<1x32xf32> to vector<128x32xf32>
    %19 = arith.addf %16, %18 : vector<128x32xf32>
    %cst_17 = arith.constant 0.000000e+00 : f32
    %20 = vector.broadcast %cst_17 : f32 to vector<128x32xf32>
    %21 = arith.maximumf %19, %20 : vector<128x32xf32>
    %c0_18 = arith.constant 0 : index
    %c0_19 = arith.constant 0 : index
    %22 = vector.load %arg8[%c0_18, %c0_19] : memref<128x32xf32, #tpu.memory_space<vmem>>, vector<128x32xf32>
    tpu.vector_store %arg8[%c0_18, %c0_19], %21 {strides = array<i32>} : memref<128x32xf32, #tpu.memory_space<vmem>>, vector<128x32xf32>,
    return
  }
  func.func @transform_0(%arg0: i32) -> (i32, i32) {
    %c0_i32 = arith.constant 0 : i32
    %c0_i32_0 = arith.constant 0 : i32
    return %arg0, %c0_i32 : i32, i32
  }
  func.func @transform_1(%arg0: i32) -> (i32, i32) {
    %c0_i32 = arith.constant 0 : i32
    %c0_i32_0 = arith.constant 0 : i32
    %c0_i32_1 = arith.constant 0 : i32
    return %c0_i32, %c0_i32_0 : i32, i32
  }
  func.func @transform_2(%arg0: i32) -> (i32, i32) {
    %c0_i32 = arith.constant 0 : i32
    %c0_i32_0 = arith.constant 0 : i32
    %c0_i32_1 = arith.constant 0 : i32
    return %c0_i32, %c0_i32_0 : i32, i32
  }
  func.func @transform_3(%arg0: i32) -> (i32, i32) {
    %c0_i32 = arith.constant 0 : i32
    %c0_i32_0 = arith.constant 0 : i32
    %c0_i32_1 = arith.constant 0 : i32
    return %c0_i32, %c0_i32_0 : i32, i32
  }
  func.func @transform_4(%arg0: i32) -> (i32, i32) {
    %c0_i32 = arith.constant 0 : i32
    %c0_i32_0 = arith.constant 0 : i32
    %c0_i32_1 = arith.constant 0 : i32
    return %c0_i32, %c0_i32_0 : i32, i32
  }
  func.func @transform_5(%arg0: i32) -> (i32, i32) {
    %c0_i32 = arith.constant 0 : i32
    %c0_i32_0 = arith.constant 0 : i32
    %c0_i32_1 = arith.constant 0 : i32
    return %c0_i32, %c0_i32_0 : i32, i32
  }
  func.func @transform_6(%arg0: i32) -> (i32, i32) {
    %c0_i32 = arith.constant 0 : i32
    %c0_i32_0 = arith.constant 0 : i32
    %c0_i32_1 = arith.constant 0 : i32
    return %c0_i32, %c0_i32_0 : i32, i32
  }
  func.func @transform_7(%arg0: i32) -> (i32, i32) {
    %c0_i32 = arith.constant 0 : i32
    %c0_i32_0 = arith.constant 0 : i32
    return %arg0, %c0_i32 : i32, i32
  }
}

</mosaic_0001>

<bundles_post_ra>
// kernel: tpu_custom_call.1
= control target key start
LH: loop header
LB: loop body
LE: loop exit
PB: predicated region body
PF: predicated region fallthrough
CT: control target
= control target key end

     0   :  { %vm53_vm0 = vcmask 261120   ;;  %s1287_s1 = inlined_call_operand.vmem [shape: f32[32,128], index: 1, kind: input, shape index: {}]   ;;  %s1288_s0 = inlined_call_operand.vmem [shape: f32[128,32], index: 0, kind: input, shape index: {}]   ;;  %s1289_s3 = inlined_call_operand.vmem [shape: f32[128,128], index: 3, kind: input, shape index: {}]   ;;  %s1290_s5 = inlined_call_operand.vmem [shape: f32[128,32], index: 5, kind: input, shape index: {}]   ;;  %s1291_s2 = inlined_call_operand.vmem [shape: f32[1,128], index: 2, kind: input, shape index: {}]   ;;  %s1292_s4 = inlined_call_operand.vmem [shape: f32[1,128], index: 4, kind: input, shape index: {}]   ;;  %s1293_s6 = inlined_call_operand.vmem [shape: f32[1,32], index: 6, kind: input, shape index: {}]   ;;  %s1294_s7 = inlined_call_operand.vmem [shape: f32[128,32], index: 7, kind: output, shape index: {}]  }
   0x1   :  { %v45_v0 = vld [vmem:[%s1287_s1 + $0x18] sm:$0xff]  ;;  %v44_v1 = vld [vmem:[%s1287_s1 + $0x10] sm:$0xff]  ;;  %v26_v2 = vld [vmem:[%s1288_s0] sm:$0xff] }
   0x2   :  { %754 = vmatprep.subr.mxu0 %v45_v0  ;;  %v43_v3 = vld [vmem:[%s1287_s1 + $0x8] sm:$0xff]  ;;  %762 = vmatprep.mubr.msk.f32.mxu0 %vm53_vm0, %v26_v2  ;;  %v42_v4 = vld [vmem:[%s1287_s1] sm:$0xff]  ;;  %v278_v6 = vld [vmem:[%s1289_s3 + $0x78] sm:$0xff] }
   0x3   :  { %755 = vmatpush3.msra.mxu0 %v45_v0  ;;  %v27_v5 = vld [vmem:[%s1288_s0 + $0x8] sm:$0xff]  ;;  %v28_v7 = vld [vmem:[%s1288_s0 + $0x10] sm:$0xff]  ;;  %786 = vmatprep.subr.mxu1 %v278_v6  ;;  %v29_v10 = vld [vmem:[%s1288_s0 + $0x18] sm:$0xff] }
   0x4   :  { %756 = vmatprep.subr.mxu0 %v44_v1  ;;  %v277_v8 = vld [vmem:[%s1289_s3 + $0x70] sm:$0xff]  ;;  %787 = vmatpush3.msra.mxu1 %v278_v6  ;;  %v276_v9 = vld [vmem:[%s1289_s3 + $0x68] sm:$0xff]  ;;  %v275_v11 = vld [vmem:[%s1289_s3 + $0x60] sm:$0xff] }
   0x5   :  { %757 = vmatpush3.msra.mxu0 %v44_v1  ;;  %788 = vmatprep.subr.mxu1 %v277_v8  ;;  %v30_v12 = vld [vmem:[%s1288_s0 + $0x20] sm:$0xff]  ;;  %v274_v13 = vld [vmem:[%s1289_s3 + $0x58] sm:$0xff]  ;;  %v31_v14 = vld [vmem:[%s1288_s0 + $0x28] sm:$0xff] }
   0x6   :  { %758 = vmatprep.subr.mxu0 %v43_v3  ;;  %789 = vmatpush3.msra.mxu1 %v277_v8  ;;  %v273_v15 = vld [vmem:[%s1289_s3 + $0x50] sm:$0xff]  ;;  %v272_v17 = vld [vmem:[%s1289_s3 + $0x48] sm:$0xff]  ;;  %v33_v18 = vld [vmem:[%s1288_s0 + $0x38] sm:$0xff] }
   0x7   :  { %759 = vmatpush3.msra.mxu0 %v43_v3  ;;  %790 = vmatprep.subr.mxu1 %v276_v9  ;;  %v32_v16 = vld [vmem:[%s1288_s0 + $0x30] sm:$0xff]  ;;  %v271_v19 = vld [vmem:[%s1289_s3 + $0x40] sm:$0xff]  ;;  %v270_v21 = vld [vmem:[%s1289_s3 + $0x38] sm:$0xff] }
   0x8   :  { %760 = vmatprep.subr.mxu0 %v42_v4  ;;  %791 = vmatpush3.msra.mxu1 %v276_v9  ;;  %v34_v20 = vld [vmem:[%s1288_s0 + $0x40] sm:$0xff]  ;;  %v35_v22 = vld [vmem:[%s1288_s0 + $0x48] sm:$0xff]  ;;  %v269_v23 = vld [vmem:[%s1289_s3 + $0x30] sm:$0xff] }
   0x9   :  { %761 = vmatpush3.msra.mxu0 %v42_v4  ;;  %792 = vmatprep.subr.mxu1 %v275_v11  ;;  %v36_v24 = vld [vmem:[%s1288_s0 + $0x50] sm:$0xff]  ;;  %v268_v25 = vld [vmem:[%s1289_s3 + $0x28] sm:$0xff]  ;;  %v37_v26 = vld [vmem:[%s1288_s0 + $0x58] sm:$0xff] }
   0xa   :  { %763 = vmatmul.mubr.msk.f32.vlgmr.msra.gmra.mxu0 %vm53_vm0, %v27_v5  ;;  %793 = vmatpush3.msra.mxu1 %v275_v11  ;;  %v267_v27 = vld [vmem:[%s1289_s3 + $0x20] sm:$0xff]  ;;  %v39_v29 = vld [vmem:[%s1288_s0 + $0x68] sm:$0xff]  ;;  %v40_v30 = vld [vmem:[%s1288_s0 + $0x70] sm:$0xff] }
   0xb   :  { %765 = vmatprep.mubr.msk.f32.mxu0 %vm53_vm0, %v28_v7  ;;  %794 = vmatprep.subr.mxu1 %v274_v13  ;;  %v38_v28 = vld [vmem:[%s1288_s0 + $0x60] sm:$0xff]  ;;  %v41_v31 = vld [vmem:[%s1288_s0 + $0x78] sm:$0xff]  ;;  %v265_v33 = vld [vmem:[%s1289_s3 + $0x10] sm:$0xff] }
   0xc   :  { %795 = vmatpush3.msra.mxu1 %v274_v13  ;;  %v266_v32 = vld [vmem:[%s1289_s3 + $0x18] sm:$0xff]  ;;  %v264_v34 = vld [vmem:[%s1289_s3 + $0x8] sm:$0xff]  ;;  %v263_v35 = vld [vmem:[%s1289_s3] sm:$0xff] }
   0xd   :  { %796 = vmatprep.subr.mxu1 %v273_v15  ;;  %v462_v36 = vld [vmem:[%s1290_s5 + $0x78] sm:$0xff]  ;;  %v461_v37 = vld [vmem:[%s1290_s5 + $0x70] sm:$0xff]  ;;  %v460_v38 = vld [vmem:[%s1290_s5 + $0x68] sm:$0xff] }
   0xe   :  { %766 = vmatmul.mubr.msk.f32.gmra.mxu0 %vm53_vm0, %v29_v10  ;;  %797 = vmatpush3.msra.mxu1 %v273_v15  ;;  %v1106_v39 = vld [vmem:[%s1290_s5 + $0x60] sm:$0xff]  ;;  %v1111_v40 = vld [vmem:[%s1290_s5 + $0x58] sm:$0xff]  ;;  %v1118_v41 = vld [vmem:[%s1290_s5 + $0x50] sm:$0xff] }
   0xf   :  { %768 = vmatprep.mubr.msk.f32.mxu0 %vm53_vm0, %v30_v12  ;;  %798 = vmatprep.subr.mxu1 %v272_v17  ;;  %v1125_v42 = vld [vmem:[%s1290_s5 + $0x48] sm:$0xff]  ;;  %v1132_v43 = vld [vmem:[%s1290_s5 + $0x40] sm:$0xff]  ;;  %v1139_v44 = vld [vmem:[%s1290_s5 + $0x38] sm:$0xff] }
  0x10   :  { %799 = vmatpush3.msra.mxu1 %v272_v17  ;;  %842 = vmatprep.subr.mxu0 %v462_v36  ;;  %v1146_v45 = vld [vmem:[%s1290_s5 + $0x30] sm:$0xff]  ;;  %v1153_v46 = vld [vmem:[%s1290_s5 + $0x28] sm:$0xff]  ;;  %v1160_v47 = vld [vmem:[%s1290_s5 + $0x20] sm:$0xff] }
  0x11   :  { %800 = vmatprep.subr.mxu1 %v271_v19  ;;  %843 = vmatpush3.msra.mxu0 %v462_v36  ;;  %v1169_v48 = vld [vmem:[%s1291_s2] ss:$0 sm:$0xff] }
  0x12   :  { %769 = vmatmul.mubr.msk.f32.gmra.mxu0 %vm53_vm0, %v31_v14  ;;  %801 = vmatpush3.msra.mxu1 %v271_v19 }
  0x13   :  { %771 = vmatprep.mubr.msk.f32.mxu0 %vm53_vm0, %v32_v16  ;;  %802 = vmatprep.subr.mxu1 %v270_v21 }
  0x14   :  { %803 = vmatpush3.msra.mxu1 %v270_v21  ;;  %844 = vmatprep.subr.mxu0 %v461_v37 }
  0x15   :  { %804 = vmatprep.subr.mxu1 %v269_v23  ;;  %845 = vmatpush3.msra.mxu0 %v461_v37 }
  0x16   :  { %772 = vmatmul.mubr.msk.f32.gmra.mxu0 %vm53_vm0, %v33_v18  ;;  %805 = vmatpush3.msra.mxu1 %v269_v23 }
  0x17   :  { %774 = vmatprep.mubr.msk.f32.mxu0 %vm53_vm0, %v34_v20  ;;  %806 = vmatprep.subr.mxu1 %v268_v25 }
  0x18   :  { %807 = vmatpush3.msra.mxu1 %v268_v25  ;;  %846 = vmatprep.subr.mxu0 %v460_v38 }
  0x19   :  { %808 = vmatprep.subr.mxu1 %v267_v27  ;;  %847 = vmatpush3.msra.mxu0 %v460_v38 }
  0x1a   :  { %775 = vmatmul.mubr.msk.f32.gmra.mxu0 %vm53_vm0, %v35_v22  ;;  %809 = vmatpush3.msra.mxu1 %v267_v27 }
  0x1b   :  { %777 = vmatprep.mubr.msk.f32.mxu0 %vm53_vm0, %v36_v24  ;;  %810 = vmatprep.subr.mxu1 %v266_v32 }
  0x1c   :  { %811 = vmatpush3.msra.mxu1 %v266_v32  ;;  %848 = vmatprep.subr.mxu0 %v1106_v39 }
  0x1d   :  { %812 = vmatprep.subr.mxu1 %v265_v33  ;;  %849 = vmatpush3.msra.mxu0 %v1106_v39 }
  0x1e   :  { %778 = vmatmul.mubr.msk.f32.gmra.mxu0 %vm53_vm0, %v37_v26  ;;  %813 = vmatpush3.msra.mxu1 %v265_v33  ;;  %v450_v33 = vld [vmem:[%s1290_s5 + $0x18] sm:$0xff] }
  0x1f   :  { %780 = vmatprep.mubr.msk.f32.mxu0 %vm53_vm0, %v38_v28  ;;  %814 = vmatprep.subr.mxu1 %v264_v34 }
  0x20   :  { %815 = vmatpush3.msra.mxu1 %v264_v34  ;;  %850 = vmatprep.subr.mxu0 %v1111_v40  ;;  %v449_v34 = vld [vmem:[%s1290_s5 + $0x10] sm:$0xff] }
  0x21   :  { %816 = vmatprep.subr.mxu1 %v263_v35  ;;  %851 = vmatpush3.msra.mxu0 %v1111_v40 }
  0x22   :  { %781 = vmatmul.mubr.msk.f32.gmra.mxu0 %vm53_vm0, %v39_v29  ;;  %817 = vmatpush3.msra.mxu1 %v263_v35  ;;  %v448_v35 = vld [vmem:[%s1290_s5 + $0x8] sm:$0xff] }
  0x23   :  { %783 = vmatprep.mubr.msk.f32.mxu0 %vm53_vm0, %v40_v30  ;;  %898 = vmatprep.subr.mxu1 %v462_v36 }
  0x24   :  { %852 = vmatprep.subr.mxu0 %v1118_v41 }
  0x25   :  { %853 = vmatpush3.msra.mxu0 %v1118_v41 }
  0x26   :  { %784 = vmatmul.mubr.msk.f32.gmra.mxu0 %vm53_vm0, %v41_v31  ;;  %854 = vmatprep.subr.mxu0 %v1125_v42 }
  0x27   :  { %855 = vmatpush3.msra.mxu0 %v1125_v42 }
  0x28   :  { %856 = vmatprep.subr.mxu0 %v1132_v43 }
  0x29   :  { %857 = vmatpush3.msra.mxu0 %v1132_v43 }
  0x2a   :  { %858 = vmatprep.subr.mxu0 %v1139_v44 }
  0x2b   :  { %859 = vmatpush3.msra.mxu0 %v1139_v44 }
  0x2c   :  { %860 = vmatprep.subr.mxu0 %v1146_v45 }
  0x2d   :  { %861 = vmatpush3.msra.mxu0 %v1146_v45 }
  0x2e   :  { %862 = vmatprep.subr.mxu0 %v1153_v46 }
  0x2f   :  { %863 = vmatpush3.msra.mxu0 %v1153_v46 }
  0x30   :  { %864 = vmatprep.subr.mxu0 %v1160_v47 }
  0x31   :  { %865 = vmatpush3.msra.mxu0 %v1160_v47 }
  0x32   :  { %866 = vmatprep.subr.mxu0 %v450_v33 }
  0x33   :  { %867 = vmatpush3.msra.mxu0 %v450_v33 }
  0x34   :  { %868 = vmatprep.subr.mxu0 %v449_v34 }
  0x35   :  { %869 = vmatpush3.msra.mxu0 %v449_v34 }
  0x36   :  { %870 = vmatprep.subr.mxu0 %v448_v35 }
  0x37   :  { %871 = vmatpush3.msra.mxu0 %v448_v35 }
  0xca   :  { %v764_v49 = vpop.f32.mrf.mxu0 }
  0xcb   :  { %v174_v50 = vadd.f32 %v764_v49, %v1169_v48 }
  0xcc   :  { %v168_v51 = vpop.f32.mrf.mxu0 }
  0xcd   :  { %v169_v52 = vadd.f32 %v1169_v48, %v168_v51  ;;  %v248_v55 = vmax.f32 %v174_v50, 0.0 }
  0xce   :  { %v767_v53 = vpop.f32.mrf.mxu0 }
  0xcf   :  { %v247_v54 = vmax.f32 %v169_v52, 0.0  ;;  %v184_v56 = vadd.f32 %v767_v53, %v1169_v48 }
  0xd0   :  { %v178_v57 = vpop.f32.mrf.mxu0 }
  0xd1   :  { %v179_v58 = vadd.f32 %v1169_v48, %v178_v57  ;;  %818 = vmatprep.mubr.f32.mxu1 %v247_v54  ;;  %v250_v61 = vmax.f32 %v184_v56, 0.0 }
  0xd2   :  { %v770_v59 = vpop.f32.mrf.mxu0  ;;  %819 = vmatmul.mubr.f32.vlgmr.msra.gmra.mxu1 %v248_v55 }
  0xd3   :  { %v249_v60 = vmax.f32 %v179_v58, 0.0  ;;  %914 = vmatpush3.msra.mxu1 %v462_v36  ;;  %v194_v62 = vadd.f32 %v770_v59, %v1169_v48  ;;  %v447_v36 = vld [vmem:[%s1290_s5] sm:$0xff] }
  0xd4   :  { %v188_v63 = vpop.f32.mrf.mxu0  ;;  %899 = vmatprep.subr.mxu1 %v461_v37  ;;  %872 = vmatprep.subr.mxu0 %v447_v36 }
  0xd5   :  { %v189_v0 = vadd.f32 %v1169_v48, %v188_v63  ;;  %821 = vmatprep.mubr.f32.mxu1 %v249_v60  ;;  %915 = vmatpush3.msra.mxu1 %v461_v37  ;;  %v252_v3 = vmax.f32 %v194_v62, 0.0  ;;  %v668_v37 = vld [vmem:[%s1292_s4] ss:$0 sm:$0xff] }
  0xd6   :  { %v773_v1 = vpop.f32.mrf.mxu0  ;;  %822 = vmatmul.mubr.f32.gmra.mxu1 %v250_v61  ;;  %900 = vmatprep.subr.mxu1 %v460_v38 }
  0xd7   :  { %v251_v2 = vmax.f32 %v189_v0, 0.0  ;;  %916 = vmatpush3.msra.mxu1 %v460_v38  ;;  %v204_v4 = vadd.f32 %v773_v1, %v1169_v48  ;;  %873 = vmatpush3.msra.mxu0 %v447_v36 }
  0xd8   :  { %v198_v5 = vpop.f32.mrf.mxu0  ;;  %901 = vmatprep.subr.mxu1 %v1106_v39 }
  0xd9   :  { %v199_v6 = vadd.f32 %v1169_v48, %v198_v5  ;;  %824 = vmatprep.mubr.f32.mxu1 %v251_v2  ;;  %917 = vmatpush3.msra.mxu1 %v1106_v39  ;;  %v254_v9 = vmax.f32 %v204_v4, 0.0 }
  0xda   :  { %v776_v7 = vpop.f32.mrf.mxu0  ;;  %825 = vmatmul.mubr.f32.gmra.mxu1 %v252_v3  ;;  %902 = vmatprep.subr.mxu1 %v1111_v40 }
  0xdb   :  { %v253_v8 = vmax.f32 %v199_v6, 0.0  ;;  %918 = vmatpush3.msra.mxu1 %v1111_v40  ;;  %v214_v10 = vadd.f32 %v776_v7, %v1169_v48 }
  0xdc   :  { %v208_v11 = vpop.f32.mrf.mxu0  ;;  %903 = vmatprep.subr.mxu1 %v1118_v41 }
  0xdd   :  { %v209_v12 = vadd.f32 %v1169_v48, %v208_v11  ;;  %827 = vmatprep.mubr.f32.mxu1 %v253_v8  ;;  %919 = vmatpush3.msra.mxu1 %v1118_v41  ;;  %v256_v15 = vmax.f32 %v214_v10, 0.0 }
  0xde   :  { %v779_v13 = vpop.f32.mrf.mxu0  ;;  %828 = vmatmul.mubr.f32.gmra.mxu1 %v254_v9  ;;  %904 = vmatprep.subr.mxu1 %v1125_v42 }
  0xdf   :  { %v255_v14 = vmax.f32 %v209_v12, 0.0  ;;  %920 = vmatpush3.msra.mxu1 %v1125_v42  ;;  %v224_v16 = vadd.f32 %v779_v13, %v1169_v48 }
  0xe0   :  { %v218_v17 = vpop.f32.mrf.mxu0  ;;  %905 = vmatprep.subr.mxu1 %v1132_v43 }
  0xe1   :  { %v219_v18 = vadd.f32 %v1169_v48, %v218_v17  ;;  %830 = vmatprep.mubr.f32.mxu1 %v255_v14  ;;  %921 = vmatpush3.msra.mxu1 %v1132_v43  ;;  %v258_v21 = vmax.f32 %v224_v16, 0.0 }
  0xe2   :  { %v782_v19 = vpop.f32.mrf.mxu0  ;;  %831 = vmatmul.mubr.f32.gmra.mxu1 %v256_v15  ;;  %906 = vmatprep.subr.mxu1 %v1139_v44 }
  0xe3   :  { %v257_v20 = vmax.f32 %v219_v18, 0.0  ;;  %922 = vmatpush3.msra.mxu1 %v1139_v44  ;;  %v234_v22 = vadd.f32 %v782_v19, %v1169_v48 }
  0xe4   :  { %v228_v23 = vpop.f32.mrf.mxu0  ;;  %907 = vmatprep.subr.mxu1 %v1146_v45 }
  0xe5   :  { %v229_v24 = vadd.f32 %v1169_v48, %v228_v23  ;;  %833 = vmatprep.mubr.f32.mxu1 %v257_v20  ;;  %923 = vmatpush3.msra.mxu1 %v1146_v45  ;;  %v260_v27 = vmax.f32 %v234_v22, 0.0  ;;  %v669_v22 = vld [vmem:[%s1293_s6] ss:$0 sm:$0xff] }
  0xe6   :  { %v785_v25 = vpop.f32.mrf.mxu0  ;;  %834 = vmatmul.mubr.f32.gmra.mxu1 %v258_v21  ;;  %908 = vmatprep.subr.mxu1 %v1153_v46 }
  0xe7   :  { %v259_v26 = vmax.f32 %v229_v24, 0.0  ;;  %924 = vmatpush3.msra.mxu1 %v1153_v46  ;;  %v244_v28 = vadd.f32 %v785_v25, %v1169_v48 }
  0xe8   :  { %v238_v29 = vpop.f32.mrf.mxu0  ;;  %909 = vmatprep.subr.mxu1 %v1160_v47 }
  0xe9   :  { %v239_v30 = vadd.f32 %v1169_v48, %v238_v29  ;;  %836 = vmatprep.mubr.f32.mxu1 %v259_v26  ;;  %925 = vmatpush3.msra.mxu1 %v1160_v47  ;;  %v262_v32 = vmax.f32 %v244_v28, 0.0 }
  0xea   :  { %837 = vmatmul.mubr.f32.gmra.mxu1 %v260_v27  ;;  %910 = vmatprep.subr.mxu1 %v450_v33 }
  0xeb   :  { %v261_v31 = vmax.f32 %v239_v30, 0.0  ;;  %926 = vmatpush3.msra.mxu1 %v450_v33 }
  0xec   :  { %911 = vmatprep.subr.mxu1 %v449_v34 }
  0xed   :  { %839 = vmatprep.mubr.f32.mxu1 %v261_v31  ;;  %927 = vmatpush3.msra.mxu1 %v449_v34 }
  0xee   :  { %840 = vmatmul.mubr.f32.gmra.mxu1 %v262_v32  ;;  %912 = vmatprep.subr.mxu1 %v448_v35 }
  0xef   :  { %928 = vmatpush3.msra.mxu1 %v448_v35 }
  0xf0   :  { %913 = vmatprep.subr.mxu1 %v447_v36 }
  0xf1   :  { %929 = vmatpush3.msra.mxu1 %v447_v36 }
 0x192   :  { %v820_v38 = vpop.f32.mrf.mxu1 }
 0x193   :  { %v358_v39 = vadd.f32 %v820_v38, %v668_v37 }
 0x194   :  { %v352_v40 = vpop.f32.mrf.mxu1 }
 0x195   :  { %v353_v41 = vadd.f32 %v668_v37, %v352_v40  ;;  %v432_v44 = vmax.f32 %v358_v39, 0.0 }
 0x196   :  { %v823_v42 = vpop.f32.mrf.mxu1 }
 0x197   :  { %v431_v43 = vmax.f32 %v353_v41, 0.0  ;;  %v368_v45 = vadd.f32 %v823_v42, %v668_v37 }
 0x198   :  { %v362_v46 = vpop.f32.mrf.mxu1 }
 0x199   :  { %v363_v47 = vadd.f32 %v668_v37, %v362_v46  ;;  %874 = vmatprep.mubr.f32.mxu0 %v431_v43  ;;  %v434_v50 = vmax.f32 %v368_v45, 0.0 }
 0x19a   :  { %v826_v48 = vpop.f32.mrf.mxu1  ;;  %875 = vmatmul.mubr.f32.vlgmr.msra.gmra.mxu0 %v432_v44 }
 0x19b   :  { %v433_v49 = vmax.f32 %v363_v47, 0.0  ;;  %v378_v51 = vadd.f32 %v826_v48, %v668_v37 }
 0x19c   :  { %v372_v52 = vpop.f32.mrf.mxu1 }
 0x19d   :  { %v373_v53 = vadd.f32 %v668_v37, %v372_v52  ;;  %877 = vmatprep.mubr.f32.mxu0 %v433_v49  ;;  %v436_v56 = vmax.f32 %v378_v51, 0.0 }
 0x19e   :  { %v829_v54 = vpop.f32.mrf.mxu1  ;;  %878 = vmatmul.mubr.f32.gmra.mxu0 %v434_v50 }
 0x19f   :  { %v435_v55 = vmax.f32 %v373_v53, 0.0  ;;  %v388_v57 = vadd.f32 %v829_v54, %v668_v37 }
 0x1a0   :  { %v382_v58 = vpop.f32.mrf.mxu1 }
 0x1a1   :  { %v383_v59 = vadd.f32 %v668_v37, %v382_v58  ;;  %880 = vmatprep.mubr.f32.mxu0 %v435_v55  ;;  %v438_v62 = vmax.f32 %v388_v57, 0.0 }
 0x1a2   :  { %v832_v60 = vpop.f32.mrf.mxu1  ;;  %881 = vmatmul.mubr.f32.gmra.mxu0 %v436_v56 }
 0x1a3   :  { %v437_v61 = vmax.f32 %v383_v59, 0.0  ;;  %v398_v63 = vadd.f32 %v832_v60, %v668_v37 }
 0x1a4   :  { %v392_v0 = vpop.f32.mrf.mxu1 }
 0x1a5   :  { %v393_v1 = vadd.f32 %v668_v37, %v392_v0  ;;  %883 = vmatprep.mubr.f32.mxu0 %v437_v61  ;;  %v440_v4 = vmax.f32 %v398_v63, 0.0 }
 0x1a6   :  { %v835_v2 = vpop.f32.mrf.mxu1  ;;  %884 = vmatmul.mubr.f32.gmra.mxu0 %v438_v62 }
 0x1a7   :  { %v439_v3 = vmax.f32 %v393_v1, 0.0  ;;  %v408_v5 = vadd.f32 %v835_v2, %v668_v37 }
 0x1a8   :  { %v402_v6 = vpop.f32.mrf.mxu1 }
 0x1a9   :  { %v403_v7 = vadd.f32 %v668_v37, %v402_v6  ;;  %886 = vmatprep.mubr.f32.mxu0 %v439_v3  ;;  %v442_v10 = vmax.f32 %v408_v5, 0.0 }
 0x1aa   :  { %v838_v8 = vpop.f32.mrf.mxu1  ;;  %887 = vmatmul.mubr.f32.gmra.mxu0 %v440_v4 }
 0x1ab   :  { %v441_v9 = vmax.f32 %v403_v7, 0.0  ;;  %v418_v11 = vadd.f32 %v838_v8, %v668_v37 }
 0x1ac   :  { %v412_v12 = vpop.f32.mrf.mxu1 }
 0x1ad   :  { %v413_v13 = vadd.f32 %v668_v37, %v412_v12  ;;  %889 = vmatprep.mubr.f32.mxu0 %v441_v9  ;;  %v444_v16 = vmax.f32 %v418_v11, 0.0 }
 0x1ae   :  { %v841_v14 = vpop.f32.mrf.mxu1  ;;  %890 = vmatmul.mubr.f32.gmra.mxu0 %v442_v10 }
 0x1af   :  { %v443_v15 = vmax.f32 %v413_v13, 0.0  ;;  %v428_v17 = vadd.f32 %v841_v14, %v668_v37 }
 0x1b0   :  { %v422_v18 = vpop.f32.mrf.mxu1 }
 0x1b1   :  { %v423_v19 = vadd.f32 %v668_v37, %v422_v18  ;;  %892 = vmatprep.mubr.f32.mxu0 %v443_v15  ;;  %v446_v21 = vmax.f32 %v428_v17, 0.0 }
 0x1b2   :  { %893 = vmatmul.mubr.f32.gmra.mxu0 %v444_v16 }
 0x1b3   :  { %v445_v20 = vmax.f32 %v423_v19, 0.0 }
 0x1b5   :  { %895 = vmatprep.mubr.f32.mxu1 %v445_v20 }
 0x1b6   :  { %896 = vmatmul.mubr.f32.vlgmr.msra.gmra.mxu1 %v446_v21 }
 0x25a   :  { %v876_v23 = vpop.f32.mrf.mxu0 }
 0x25b   :  { %v542_v24 = vadd.f32 %v876_v23, %v669_v22 }
 0x25c   :  { %v536_v25 = vpop.f32.mrf.mxu0 }
 0x25d   :  { %v616_v26 = vmax.f32 %v542_v24, 0.0  ;;  %v537_v27 = vadd.f32 %v669_v22, %v536_v25 }
 0x25e   :  { %v879_v28 = vpop.f32.mrf.mxu0 }
 0x25f   :  { %632 = vst.msk [vmem:[%s1294_s7 + $0x8] sm:$0xff] %vm53_vm0, %v616_v26  ;;  %v615_v29 = vmax.f32 %v537_v27, 0.0  ;;  %v552_v30 = vadd.f32 %v879_v28, %v669_v22 }
 0x260   :  { %v546_v31 = vpop.f32.mrf.mxu0 }
 0x261   :  { %631 = vst.msk [vmem:[%s1294_s7] sm:$0xff] %vm53_vm0, %v615_v29  ;;  %v618_v32 = vmax.f32 %v552_v30, 0.0  ;;  %v547_v33 = vadd.f32 %v669_v22, %v546_v31 }
 0x262   :  { %v882_v34 = vpop.f32.mrf.mxu0 }
 0x263   :  { %634 = vst.msk [vmem:[%s1294_s7 + $0x18] sm:$0xff] %vm53_vm0, %v618_v32  ;;  %v617_v35 = vmax.f32 %v547_v33, 0.0  ;;  %v562_v36 = vadd.f32 %v882_v34, %v669_v22 }
 0x264   :  { %v556_v37 = vpop.f32.mrf.mxu0 }
 0x265   :  { %633 = vst.msk [vmem:[%s1294_s7 + $0x10] sm:$0xff] %vm53_vm0, %v617_v35  ;;  %v620_v38 = vmax.f32 %v562_v36, 0.0  ;;  %v557_v39 = vadd.f32 %v669_v22, %v556_v37 }
 0x266   :  { %v885_v40 = vpop.f32.mrf.mxu0 }
 0x267   :  { %636 = vst.msk [vmem:[%s1294_s7 + $0x28] sm:$0xff] %vm53_vm0, %v620_v38  ;;  %v619_v41 = vmax.f32 %v557_v39, 0.0  ;;  %v572_v42 = vadd.f32 %v885_v40, %v669_v22 }
 0x268   :  { %v566_v43 = vpop.f32.mrf.mxu0 }
 0x269   :  { %635 = vst.msk [vmem:[%s1294_s7 + $0x20] sm:$0xff] %vm53_vm0, %v619_v41  ;;  %v622_v44 = vmax.f32 %v572_v42, 0.0  ;;  %v567_v45 = vadd.f32 %v669_v22, %v566_v43 }
 0x26a   :  { %v888_v46 = vpop.f32.mrf.mxu0 }
 0x26b   :  { %638 = vst.msk [vmem:[%s1294_s7 + $0x38] sm:$0xff] %vm53_vm0, %v622_v44  ;;  %v621_v47 = vmax.f32 %v567_v45, 0.0  ;;  %v582_v48 = vadd.f32 %v888_v46, %v669_v22 }
 0x26c   :  { %v576_v49 = vpop.f32.mrf.mxu0 }
 0x26d   :  { %637 = vst.msk [vmem:[%s1294_s7 + $0x30] sm:$0xff] %vm53_vm0, %v621_v47  ;;  %v624_v50 = vmax.f32 %v582_v48, 0.0  ;;  %v577_v51 = vadd.f32 %v669_v22, %v576_v49 }
 0x26e   :  { %v891_v52 = vpop.f32.mrf.mxu0 }
 0x26f   :  { %640 = vst.msk [vmem:[%s1294_s7 + $0x48] sm:$0xff] %vm53_vm0, %v624_v50  ;;  %v623_v53 = vmax.f32 %v577_v51, 0.0  ;;  %v592_v54 = vadd.f32 %v891_v52, %v669_v22 }
 0x270   :  { %v586_v55 = vpop.f32.mrf.mxu0 }
 0x271   :  { %639 = vst.msk [vmem:[%s1294_s7 + $0x40] sm:$0xff] %vm53_vm0, %v623_v53  ;;  %v626_v56 = vmax.f32 %v592_v54, 0.0  ;;  %v587_v57 = vadd.f32 %v669_v22, %v586_v55 }
 0x272   :  { %v894_v58 = vpop.f32.mrf.mxu0 }
 0x273   :  { %642 = vst.msk [vmem:[%s1294_s7 + $0x58] sm:$0xff] %vm53_vm0, %v626_v56  ;;  %v625_v59 = vmax.f32 %v587_v57, 0.0  ;;  %v602_v60 = vadd.f32 %v894_v58, %v669_v22 }
 0x274   :  { %v596_v61 = vpop.f32.mrf.mxu0 }
 0x275   :  { %641 = vst.msk [vmem:[%s1294_s7 + $0x50] sm:$0xff] %vm53_vm0, %v625_v59  ;;  %v628_v62 = vmax.f32 %v602_v60, 0.0  ;;  %v597_v63 = vadd.f32 %v669_v22, %v596_v61 }
 0x276   :  { %v897_v0 = vpop.f32.mrf.mxu1 }
 0x277   :  { %644 = vst.msk [vmem:[%s1294_s7 + $0x68] sm:$0xff] %vm53_vm0, %v628_v62  ;;  %v627_v1 = vmax.f32 %v597_v63, 0.0  ;;  %v612_v2 = vadd.f32 %v897_v0, %v669_v22 }
 0x278   :  { %v606_v3 = vpop.f32.mrf.mxu1 }
 0x279   :  { %643 = vst.msk [vmem:[%s1294_s7 + $0x60] sm:$0xff] %vm53_vm0, %v627_v1  ;;  %v630_v4 = vmax.f32 %v612_v2, 0.0  ;;  %v607_v5 = vadd.f32 %v669_v22, %v606_v3 }
 0x27b   :  { %646 = vst.msk [vmem:[%s1294_s7 + $0x78] sm:$0xff] %vm53_vm0, %v630_v4  ;;  %v629_v6 = vmax.f32 %v607_v5, 0.0 }
 0x27d   :  { %645 = vst.msk [vmem:[%s1294_s7 + $0x70] sm:$0xff] %vm53_vm0, %v629_v6 }

// kernel: tpu_custom_call.1
= control target key start
LH: loop header
LB: loop body
LE: loop exit
PB: predicated region body
PF: predicated region fallthrough
CT: control target
= control target key end

     0   :  { %vm53_vm0 = vcmask 261120   ;;  %s1287_s1 = inlined_call_operand.vmem [shape: f32[32,128], index: 1, kind: input, shape index: {}]   ;;  %s1288_s0 = inlined_call_operand.vmem [shape: f32[128,32], index: 0, kind: input, shape index: {}]   ;;  %s1289_s3 = inlined_call_operand.vmem [shape: f32[128,128], index: 3, kind: input, shape index: {}]   ;;  %s1290_s5 = inlined_call_operand.vmem [shape: f32[128,32], index: 5, kind: input, shape index: {}]   ;;  %s1291_s2 = inlined_call_operand.vmem [shape: f32[1,128], index: 2, kind: input, shape index: {}]   ;;  %s1292_s4 = inlined_call_operand.vmem [shape: f32[1,128], index: 4, kind: input, shape index: {}]   ;;  %s1293_s6 = inlined_call_operand.vmem [shape: f32[1,32], index: 6, kind: input, shape index: {}]   ;;  %s1294_s7 = inlined_call_operand.vmem [shape: f32[128,32], index: 7, kind: output, shape index: {}]  }
   0x1   :  { %v45_v0 = vld [vmem:[%s1287_s1 + $0x18] sm:$0xff]  ;;  %v44_v1 = vld [vmem:[%s1287_s1 + $0x10] sm:$0xff]  ;;  %v26_v2 = vld [vmem:[%s1288_s0] sm:$0xff] }
   0x2   :  { %754 = vmatprep.subr.mxu0 %v45_v0  ;;  %v43_v3 = vld [vmem:[%s1287_s1 + $0x8] sm:$0xff]  ;;  %762 = vmatprep.mubr.msk.f32.mxu0 %vm53_vm0, %v26_v2  ;;  %v42_v4 = vld [vmem:[%s1287_s1] sm:$0xff]  ;;  %v278_v6 = vld [vmem:[%s1289_s3 + $0x78] sm:$0xff] }
   0x3   :  { %755 = vmatpush3.msra.mxu0 %v45_v0  ;;  %v27_v5 = vld [vmem:[%s1288_s0 + $0x8] sm:$0xff]  ;;  %v28_v7 = vld [vmem:[%s1288_s0 + $0x10] sm:$0xff]  ;;  %786 = vmatprep.subr.mxu1 %v278_v6  ;;  %v29_v10 = vld [vmem:[%s1288_s0 + $0x18] sm:$0xff] }
   0x4   :  { %756 = vmatprep.subr.mxu0 %v44_v1  ;;  %v277_v8 = vld [vmem:[%s1289_s3 + $0x70] sm:$0xff]  ;;  %787 = vmatpush3.msra.mxu1 %v278_v6  ;;  %v276_v9 = vld [vmem:[%s1289_s3 + $0x68] sm:$0xff]  ;;  %v275_v11 = vld [vmem:[%s1289_s3 + $0x60] sm:$0xff] }
   0x5   :  { %757 = vmatpush3.msra.mxu0 %v44_v1  ;;  %788 = vmatprep.subr.mxu1 %v277_v8  ;;  %v30_v12 = vld [vmem:[%s1288_s0 + $0x20] sm:$0xff]  ;;  %v274_v13 = vld [vmem:[%s1289_s3 + $0x58] sm:$0xff]  ;;  %v31_v14 = vld [vmem:[%s1288_s0 + $0x28] sm:$0xff] }
   0x6   :  { %758 = vmatprep.subr.mxu0 %v43_v3  ;;  %789 = vmatpush3.msra.mxu1 %v277_v8  ;;  %v273_v15 = vld [vmem:[%s1289_s3 + $0x50] sm:$0xff]  ;;  %v272_v17 = vld [vmem:[%s1289_s3 + $0x48] sm:$0xff]  ;;  %v33_v18 = vld [vmem:[%s1288_s0 + $0x38] sm:$0xff] }
   0x7   :  { %759 = vmatpush3.msra.mxu0 %v43_v3  ;;  %790 = vmatprep.subr.mxu1 %v276_v9  ;;  %v32_v16 = vld [vmem:[%s1288_s0 + $0x30] sm:$0xff]  ;;  %v271_v19 = vld [vmem:[%s1289_s3 + $0x40] sm:$0xff]  ;;  %v270_v21 = vld [vmem:[%s1289_s3 + $0x38] sm:$0xff] }
   0x8   :  { %760 = vmatprep.subr.mxu0 %v42_v4  ;;  %791 = vmatpush3.msra.mxu1 %v276_v9  ;;  %v34_v20 = vld [vmem:[%s1288_s0 + $0x40] sm:$0xff]  ;;  %v35_v22 = vld [vmem:[%s1288_s0 + $0x48] sm:$0xff]  ;;  %v269_v23 = vld [vmem:[%s1289_s3 + $0x30] sm:$0xff] }
   0x9   :  { %761 = vmatpush3.msra.mxu0 %v42_v4  ;;  %792 = vmatprep.subr.mxu1 %v275_v11  ;;  %v36_v24 = vld [vmem:[%s1288_s0 + $0x50] sm:$0xff]  ;;  %v268_v25 = vld [vmem:[%s1289_s3 + $0x28] sm:$0xff]  ;;  %v37_v26 = vld [vmem:[%s1288_s0 + $0x58] sm:$0xff] }
   0xa   :  { %763 = vmatmul.mubr.msk.f32.vlgmr.msra.gmra.mxu0 %vm53_vm0, %v27_v5  ;;  %793 = vmatpush3.msra.mxu1 %v275_v11  ;;  %v267_v27 = vld [vmem:[%s1289_s3 + $0x20] sm:$0xff]  ;;  %v39_v29 = vld [vmem:[%s1288_s0 + $0x68] sm:$0xff]  ;;  %v40_v30 = vld [vmem:[%s1288_s0 + $0x70] sm:$0xff] }
   0xb   :  { %765 = vmatprep.mubr.msk.f32.mxu0 %vm53_vm0, %v28_v7  ;;  %794 = vmatprep.subr.mxu1 %v274_v13  ;;  %v38_v28 = vld [vmem:[%s1288_s0 + $0x60] sm:$0xff]  ;;  %v41_v31 = vld [vmem:[%s1288_s0 + $0x78] sm:$0xff]  ;;  %v265_v33 = vld [vmem:[%s1289_s3 + $0x10] sm:$0xff] }
   0xc   :  { %795 = vmatpush3.msra.mxu1 %v274_v13  ;;  %v266_v32 = vld [vmem:[%s1289_s3 + $0x18] sm:$0xff]  ;;  %v264_v34 = vld [vmem:[%s1289_s3 + $0x8] sm:$0xff]  ;;  %v263_v35 = vld [vmem:[%s1289_s3] sm:$0xff] }
   0xd   :  { %796 = vmatprep.subr.mxu1 %v273_v15  ;;  %v462_v36 = vld [vmem:[%s1290_s5 + $0x78] sm:$0xff]  ;;  %v461_v37 = vld [vmem:[%s1290_s5 + $0x70] sm:$0xff]  ;;  %v460_v38 = vld [vmem:[%s1290_s5 + $0x68] sm:$0xff] }
   0xe   :  { %766 = vmatmul.mubr.msk.f32.gmra.mxu0 %vm53_vm0, %v29_v10  ;;  %797 = vmatpush3.msra.mxu1 %v273_v15  ;;  %v1106_v39 = vld [vmem:[%s1290_s5 + $0x60] sm:$0xff]  ;;  %v1111_v40 = vld [vmem:[%s1290_s5 + $0x58] sm:$0xff]  ;;  %v1118_v41 = vld [vmem:[%s1290_s5 + $0x50] sm:$0xff] }
   0xf   :  { %768 = vmatprep.mubr.msk.f32.mxu0 %vm53_vm0, %v30_v12  ;;  %798 = vmatprep.subr.mxu1 %v272_v17  ;;  %v1125_v42 = vld [vmem:[%s1290_s5 + $0x48] sm:$0xff]  ;;  %v1132_v43 = vld [vmem:[%s1290_s5 + $0x40] sm:$0xff]  ;;  %v1139_v44 = vld [vmem:[%s1290_s5 + $0x38] sm:$0xff] }
  0x10   :  { %799 = vmatpush3.msra.mxu1 %v272_v17  ;;  %842 = vmatprep.subr.mxu0 %v462_v36  ;;  %v1146_v45 = vld [vmem:[%s1290_s5 + $0x30] sm:$0xff]  ;;  %v1153_v46 = vld [vmem:[%s1290_s5 + $0x28] sm:$0xff]  ;;  %v1160_v47 = vld [vmem:[%s1290_s5 + $0x20] sm:$0xff] }
  0x11   :  { %800 = vmatprep.subr.mxu1 %v271_v19  ;;  %843 = vmatpush3.msra.mxu0 %v462_v36  ;;  %v1169_v48 = vld [vmem:[%s1291_s2] ss:$0 sm:$0xff] }
  0x12   :  { %769 = vmatmul.mubr.msk.f32.gmra.mxu0 %vm53_vm0, %v31_v14  ;;  %801 = vmatpush3.msra.mxu1 %v271_v19 }
  0x13   :  { %771 = vmatprep.mubr.msk.f32.mxu0 %vm53_vm0, %v32_v16  ;;  %802 = vmatprep.subr.mxu1 %v270_v21 }
  0x14   :  { %803 = vmatpush3.msra.mxu1 %v270_v21  ;;  %844 = vmatprep.subr.mxu0 %v461_v37 }
  0x15   :  { %804 = vmatprep.subr.mxu1 %v269_v23  ;;  %845 = vmatpush3.msra.mxu0 %v461_v37 }
  0x16   :  { %772 = vmatmul.mubr.msk.f32.gmra.mxu0 %vm53_vm0, %v33_v18  ;;  %805 = vmatpush3.msra.mxu1 %v269_v23 }
  0x17   :  { %774 = vmatprep.mubr.msk.f32.mxu0 %vm53_vm0, %v34_v20  ;;  %806 = vmatprep.subr.mxu1 %v268_v25 }
  0x18   :  { %807 = vmatpush3.msra.mxu1 %v268_v25  ;;  %846 = vmatprep.subr.mxu0 %v460_v38 }
  0x19   :  { %808 = vmatprep.subr.mxu1 %v267_v27  ;;  %847 = vmatpush3.msra.mxu0 %v460_v38 }
  0x1a   :  { %775 = vmatmul.mubr.msk.f32.gmra.mxu0 %vm53_vm0, %v35_v22  ;;  %809 = vmatpush3.msra.mxu1 %v267_v27 }
  0x1b   :  { %777 = vmatprep.mubr.msk.f32.mxu0 %vm53_vm0, %v36_v24  ;;  %810 = vmatprep.subr.mxu1 %v266_v32 }
  0x1c   :  { %811 = vmatpush3.msra.mxu1 %v266_v32  ;;  %848 = vmatprep.subr.mxu0 %v1106_v39 }
  0x1d   :  { %812 = vmatprep.subr.mxu1 %v265_v33  ;;  %849 = vmatpush3.msra.mxu0 %v1106_v39 }
  0x1e   :  { %778 = vmatmul.mubr.msk.f32.gmra.mxu0 %vm53_vm0, %v37_v26  ;;  %813 = vmatpush3.msra.mxu1 %v265_v33  ;;  %v450_v33 = vld [vmem:[%s1290_s5 + $0x18] sm:$0xff] }
  0x1f   :  { %780 = vmatprep.mubr.msk.f32.mxu0 %vm53_vm0, %v38_v28  ;;  %814 = vmatprep.subr.mxu1 %v264_v34 }
  0x20   :  { %815 = vmatpush3.msra.mxu1 %v264_v34  ;;  %850 = vmatprep.subr.mxu0 %v1111_v40  ;;  %v449_v34 = vld [vmem:[%s1290_s5 + $0x10] sm:$0xff] }
  0x21   :  { %816 = vmatprep.subr.mxu1 %v263_v35  ;;  %851 = vmatpush3.msra.mxu0 %v1111_v40 }
  0x22   :  { %781 = vmatmul.mubr.msk.f32.gmra.mxu0 %vm53_vm0, %v39_v29  ;;  %817 = vmatpush3.msra.mxu1 %v263_v35  ;;  %v448_v35 = vld [vmem:[%s1290_s5 + $0x8] sm:$0xff] }
  0x23   :  { %783 = vmatprep.mubr.msk.f32.mxu0 %vm53_vm0, %v40_v30  ;;  %898 = vmatprep.subr.mxu1 %v462_v36 }
  0x24   :  { %852 = vmatprep.subr.mxu0 %v1118_v41 }
  0x25   :  { %853 = vmatpush3.msra.mxu0 %v1118_v41 }
  0x26   :  { %784 = vmatmul.mubr.msk.f32.gmra.mxu0 %vm53_vm0, %v41_v31  ;;  %854 = vmatprep.subr.mxu0 %v1125_v42 }
  0x27   :  { %855 = vmatpush3.msra.mxu0 %v1125_v42 }
  0x28   :  { %856 = vmatprep.subr.mxu0 %v1132_v43 }
  0x29   :  { %857 = vmatpush3.msra.mxu0 %v1132_v43 }
  0x2a   :  { %858 = vmatprep.subr.mxu0 %v1139_v44 }
  0x2b   :  { %859 = vmatpush3.msra.mxu0 %v1139_v44 }
  0x2c   :  { %860 = vmatprep.subr.mxu0 %v1146_v45 }
  0x2d   :  { %861 = vmatpush3.msra.mxu0 %v1146_v45 }
  0x2e   :  { %862 = vmatprep.subr.mxu0 %v1153_v46 }
  0x2f   :  { %863 = vmatpush3.msra.mxu0 %v1153_v46 }
  0x30   :  { %864 = vmatprep.subr.mxu0 %v1160_v47 }
  0x31   :  { %865 = vmatpush3.msra.mxu0 %v1160_v47 }
  0x32   :  { %866 = vmatprep.subr.mxu0 %v450_v33 }
  0x33   :  { %867 = vmatpush3.msra.mxu0 %v450_v33 }
  0x34   :  { %868 = vmatprep.subr.mxu0 %v449_v34 }
  0x35   :  { %869 = vmatpush3.msra.mxu0 %v449_v34 }
  0x36   :  { %870 = vmatprep.subr.mxu0 %v448_v35 }
  0x37   :  { %871 = vmatpush3.msra.mxu0 %v448_v35 }
  0xca   :  { %v764_v49 = vpop.f32.mrf.mxu0 }
  0xcb   :  { %v174_v50 = vadd.f32 %v764_v49, %v1169_v48 }
  0xcc   :  { %v168_v51 = vpop.f32.mrf.mxu0 }
  0xcd   :  { %v169_v52 = vadd.f32 %v1169_v48, %v168_v51  ;;  %v248_v55 = vmax.f32 %v174_v50, 0.0 }
  0xce   :  { %v767_v53 = vpop.f32.mrf.mxu0 }
  0xcf   :  { %v247_v54 = vmax.f32 %v169_v52, 0.0  ;;  %v184_v56 = vadd.f32 %v767_v53, %v1169_v48 }
  0xd0   :  { %v178_v57 = vpop.f32.mrf.mxu0 }
  0xd1   :  { %v179_v58 = vadd.f32 %v1169_v48, %v178_v57  ;;  %818 = vmatprep.mubr.f32.mxu1 %v247_v54  ;;  %v250_v61 = vmax.f32 %v184_v56, 0.0 }
  0xd2   :  { %v770_v59 = vpop.f32.mrf.mxu0  ;;  %819 = vmatmul.mubr.f32.vlgmr.msra.gmra.mxu1 %v248_v55 }
  0xd3   :  { %v249_v60 = vmax.f32 %v179_v58, 0.0  ;;  %914 = vmatpush3.msra.mxu1 %v462_v36  ;;  %v194_v62 = vadd.f32 %v770_v59, %v1169_v48  ;;  %v447_v36 = vld [vmem:[%s1290_s5] sm:$0xff] }
  0xd4   :  { %v188_v63 = vpop.f32.mrf.mxu0  ;;  %899 = vmatprep.subr.mxu1 %v461_v37  ;;  %872 = vmatprep.subr.mxu0 %v447_v36 }
  0xd5   :  { %v189_v0 = vadd.f32 %v1169_v48, %v188_v63  ;;  %821 = vmatprep.mubr.f32.mxu1 %v249_v60  ;;  %915 = vmatpush3.msra.mxu1 %v461_v37  ;;  %v252_v3 = vmax.f32 %v194_v62, 0.0  ;;  %v668_v37 = vld [vmem:[%s1292_s4] ss:$0 sm:$0xff] }
  0xd6   :  { %v773_v1 = vpop.f32.mrf.mxu0  ;;  %822 = vmatmul.mubr.f32.gmra.mxu1 %v250_v61  ;;  %900 = vmatprep.subr.mxu1 %v460_v38 }
  0xd7   :  { %v251_v2 = vmax.f32 %v189_v0, 0.0  ;;  %916 = vmatpush3.msra.mxu1 %v460_v38  ;;  %v204_v4 = vadd.f32 %v773_v1, %v1169_v48  ;;  %873 = vmatpush3.msra.mxu0 %v447_v36 }
  0xd8   :  { %v198_v5 = vpop.f32.mrf.mxu0  ;;  %901 = vmatprep.subr.mxu1 %v1106_v39 }
  0xd9   :  { %v199_v6 = vadd.f32 %v1169_v48, %v198_v5  ;;  %824 = vmatprep.mubr.f32.mxu1 %v251_v2  ;;  %917 = vmatpush3.msra.mxu1 %v1106_v39  ;;  %v254_v9 = vmax.f32 %v204_v4, 0.0 }
  0xda   :  { %v776_v7 = vpop.f32.mrf.mxu0  ;;  %825 = vmatmul.mubr.f32.gmra.mxu1 %v252_v3  ;;  %902 = vmatprep.subr.mxu1 %v1111_v40 }
  0xdb   :  { %v253_v8 = vmax.f32 %v199_v6, 0.0  ;;  %918 = vmatpush3.msra.mxu1 %v1111_v40  ;;  %v214_v10 = vadd.f32 %v776_v7, %v1169_v48 }
  0xdc   :  { %v208_v11 = vpop.f32.mrf.mxu0  ;;  %903 = vmatprep.subr.mxu1 %v1118_v41 }
  0xdd   :  { %v209_v12 = vadd.f32 %v1169_v48, %v208_v11  ;;  %827 = vmatprep.mubr.f32.mxu1 %v253_v8  ;;  %919 = vmatpush3.msra.mxu1 %v1118_v41  ;;  %v256_v15 = vmax.f32 %v214_v10, 0.0 }
  0xde   :  { %v779_v13 = vpop.f32.mrf.mxu0  ;;  %828 = vmatmul.mubr.f32.gmra.mxu1 %v254_v9  ;;  %904 = vmatprep.subr.mxu1 %v1125_v42 }
  0xdf   :  { %v255_v14 = vmax.f32 %v209_v12, 0.0  ;;  %920 = vmatpush3.msra.mxu1 %v1125_v42  ;;  %v224_v16 = vadd.f32 %v779_v13, %v1169_v48 }
  0xe0   :  { %v218_v17 = vpop.f32.mrf.mxu0  ;;  %905 = vmatprep.subr.mxu1 %v1132_v43 }
  0xe1   :  { %v219_v18 = vadd.f32 %v1169_v48, %v218_v17  ;;  %830 = vmatprep.mubr.f32.mxu1 %v255_v14  ;;  %921 = vmatpush3.msra.mxu1 %v1132_v43  ;;  %v258_v21 = vmax.f32 %v224_v16, 0.0 }
  0xe2   :  { %v782_v19 = vpop.f32.mrf.mxu0  ;;  %831 = vmatmul.mubr.f32.gmra.mxu1 %v256_v15  ;;  %906 = vmatprep.subr.mxu1 %v1139_v44 }
  0xe3   :  { %v257_v20 = vmax.f32 %v219_v18, 0.0  ;;  %922 = vmatpush3.msra.mxu1 %v1139_v44  ;;  %v234_v22 = vadd.f32 %v782_v19, %v1169_v48 }
  0xe4   :  { %v228_v23 = vpop.f32.mrf.mxu0  ;;  %907 = vmatprep.subr.mxu1 %v1146_v45 }
  0xe5   :  { %v229_v24 = vadd.f32 %v1169_v48, %v228_v23  ;;  %833 = vmatprep.mubr.f32.mxu1 %v257_v20  ;;  %923 = vmatpush3.msra.mxu1 %v1146_v45  ;;  %v260_v27 = vmax.f32 %v234_v22, 0.0  ;;  %v669_v22 = vld [vmem:[%s1293_s6] ss:$0 sm:$0xff] }
  0xe6   :  { %v785_v25 = vpop.f32.mrf.mxu0  ;;  %834 = vmatmul.mubr.f32.gmra.mxu1 %v258_v21  ;;  %908 = vmatprep.subr.mxu1 %v1153_v46 }
  0xe7   :  { %v259_v26 = vmax.f32 %v229_v24, 0.0  ;;  %924 = vmatpush3.msra.mxu1 %v1153_v46  ;;  %v244_v28 = vadd.f32 %v785_v25, %v1169_v48 }
  0xe8   :  { %v238_v29 = vpop.f32.mrf.mxu0  ;;  %909 = vmatprep.subr.mxu1 %v1160_v47 }
  0xe9   :  { %v239_v30 = vadd.f32 %v1169_v48, %v238_v29  ;;  %836 = vmatprep.mubr.f32.mxu1 %v259_v26  ;;  %925 = vmatpush3.msra.mxu1 %v1160_v47  ;;  %v262_v32 = vmax.f32 %v244_v28, 0.0 }
  0xea   :  { %837 = vmatmul.mubr.f32.gmra.mxu1 %v260_v27  ;;  %910 = vmatprep.subr.mxu1 %v450_v33 }
  0xeb   :  { %v261_v31 = vmax.f32 %v239_v30, 0.0  ;;  %926 = vmatpush3.msra.mxu1 %v450_v33 }
  0xec   :  { %911 = vmatprep.subr.mxu1 %v449_v34 }
  0xed   :  { %839 = vmatprep.mubr.f32.mxu1 %v261_v31  ;;  %927 = vmatpush3.msra.mxu1 %v449_v34 }
  0xee   :  { %840 = vmatmul.mubr.f32.gmra.mxu1 %v262_v32  ;;  %912 = vmatprep.subr.mxu1 %v448_v35 }
  0xef   :  { %928 = vmatpush3.msra.mxu1 %v448_v35 }
  0xf0   :  { %913 = vmatprep.subr.mxu1 %v447_v36 }
  0xf1   :  { %929 = vmatpush3.msra.mxu1 %v447_v36 }
 0x192   :  { %v820_v38 = vpop.f32.mrf.mxu1 }
 0x193   :  { %v358_v39 = vadd.f32 %v820_v38, %v668_v37 }
 0x194   :  { %v352_v40 = vpop.f32.mrf.mxu1 }
 0x195   :  { %v353_v41 = vadd.f32 %v668_v37, %v352_v40  ;;  %v432_v44 = vmax.f32 %v358_v39, 0.0 }
 0x196   :  { %v823_v42 = vpop.f32.mrf.mxu1 }
 0x197   :  { %v431_v43 = vmax.f32 %v353_v41, 0.0  ;;  %v368_v45 = vadd.f32 %v823_v42, %v668_v37 }
 0x198   :  { %v362_v46 = vpop.f32.mrf.mxu1 }
 0x199   :  { %v363_v47 = vadd.f32 %v668_v37, %v362_v46  ;;  %874 = vmatprep.mubr.f32.mxu0 %v431_v43  ;;  %v434_v50 = vmax.f32 %v368_v45, 0.0 }
 0x19a   :  { %v826_v48 = vpop.f32.mrf.mxu1  ;;  %875 = vmatmul.mubr.f32.vlgmr.msra.gmra.mxu0 %v432_v44 }
 0x19b   :  { %v433_v49 = vmax.f32 %v363_v47, 0.0  ;;  %v378_v51 = vadd.f32 %v826_v48, %v668_v37 }
 0x19c   :  { %v372_v52 = vpop.f32.mrf.mxu1 }
 0x19d   :  { %v373_v53 = vadd.f32 %v668_v37, %v372_v52  ;;  %877 = vmatprep.mubr.f32.mxu0 %v433_v49  ;;  %v436_v56 = vmax.f32 %v378_v51, 0.0 }
 0x19e   :  { %v829_v54 = vpop.f32.mrf.mxu1  ;;  %878 = vmatmul.mubr.f32.gmra.mxu0 %v434_v50 }
 0x19f   :  { %v435_v55 = vmax.f32 %v373_v53, 0.0  ;;  %v388_v57 = vadd.f32 %v829_v54, %v668_v37 }
 0x1a0   :  { %v382_v58 = vpop.f32.mrf.mxu1 }
 0x1a1   :  { %v383_v59 = vadd.f32 %v668_v37, %v382_v58  ;;  %880 = vmatprep.mubr.f32.mxu0 %v435_v55  ;;  %v438_v62 = vmax.f32 %v388_v57, 0.0 }
 0x1a2   :  { %v832_v60 = vpop.f32.mrf.mxu1  ;;  %881 = vmatmul.mubr.f32.gmra.mxu0 %v436_v56 }
 0x1a3   :  { %v437_v61 = vmax.f32 %v383_v59, 0.0  ;;  %v398_v63 = vadd.f32 %v832_v60, %v668_v37 }
 0x1a4   :  { %v392_v0 = vpop.f32.mrf.mxu1 }
 0x1a5   :  { %v393_v1 = vadd.f32 %v668_v37, %v392_v0  ;;  %883 = vmatprep.mubr.f32.mxu0 %v437_v61  ;;  %v440_v4 = vmax.f32 %v398_v63, 0.0 }
 0x1a6   :  { %v835_v2 = vpop.f32.mrf.mxu1  ;;  %884 = vmatmul.mubr.f32.gmra.mxu0 %v438_v62 }
 0x1a7   :  { %v439_v3 = vmax.f32 %v393_v1, 0.0  ;;  %v408_v5 = vadd.f32 %v835_v2, %v668_v37 }
 0x1a8   :  { %v402_v6 = vpop.f32.mrf.mxu1 }
 0x1a9   :  { %v403_v7 = vadd.f32 %v668_v37, %v402_v6  ;;  %886 = vmatprep.mubr.f32.mxu0 %v439_v3  ;;  %v442_v10 = vmax.f32 %v408_v5, 0.0 }
 0x1aa   :  { %v838_v8 = vpop.f32.mrf.mxu1  ;;  %887 = vmatmul.mubr.f32.gmra.mxu0 %v440_v4 }
 0x1ab   :  { %v441_v9 = vmax.f32 %v403_v7, 0.0  ;;  %v418_v11 = vadd.f32 %v838_v8, %v668_v37 }
 0x1ac   :  { %v412_v12 = vpop.f32.mrf.mxu1 }
 0x1ad   :  { %v413_v13 = vadd.f32 %v668_v37, %v412_v12  ;;  %889 = vmatprep.mubr.f32.mxu0 %v441_v9  ;;  %v444_v16 = vmax.f32 %v418_v11, 0.0 }
 0x1ae   :  { %v841_v14 = vpop.f32.mrf.mxu1  ;;  %890 = vmatmul.mubr.f32.gmra.mxu0 %v442_v10 }
 0x1af   :  { %v443_v15 = vmax.f32 %v413_v13, 0.0  ;;  %v428_v17 = vadd.f32 %v841_v14, %v668_v37 }
 0x1b0   :  { %v422_v18 = vpop.f32.mrf.mxu1 }
 0x1b1   :  { %v423_v19 = vadd.f32 %v668_v37, %v422_v18  ;;  %892 = vmatprep.mubr.f32.mxu0 %v443_v15  ;;  %v446_v21 = vmax.f32 %v428_v17, 0.0 }
 0x1b2   :  { %893 = vmatmul.mubr.f32.gmra.mxu0 %v444_v16 }
 0x1b3   :  { %v445_v20 = vmax.f32 %v423_v19, 0.0 }
 0x1b5   :  { %895 = vmatprep.mubr.f32.mxu1 %v445_v20 }
 0x1b6   :  { %896 = vmatmul.mubr.f32.vlgmr.msra.gmra.mxu1 %v446_v21 }
 0x25a   :  { %v876_v23 = vpop.f32.mrf.mxu0 }
 0x25b   :  { %v542_v24 = vadd.f32 %v876_v23, %v669_v22 }
 0x25c   :  { %v536_v25 = vpop.f32.mrf.mxu0 }
 0x25d   :  { %v616_v26 = vmax.f32 %v542_v24, 0.0  ;;  %v537_v27 = vadd.f32 %v669_v22, %v536_v25 }
 0x25e   :  { %v879_v28 = vpop.f32.mrf.mxu0 }
 0x25f   :  { %632 = vst.msk [vmem:[%s1294_s7 + $0x8] sm:$0xff] %vm53_vm0, %v616_v26  ;;  %v615_v29 = vmax.f32 %v537_v27, 0.0  ;;  %v552_v30 = vadd.f32 %v879_v28, %v669_v22 }
 0x260   :  { %v546_v31 = vpop.f32.mrf.mxu0 }
 0x261   :  { %631 = vst.msk [vmem:[%s1294_s7] sm:$0xff] %vm53_vm0, %v615_v29  ;;  %v618_v32 = vmax.f32 %v552_v30, 0.0  ;;  %v547_v33 = vadd.f32 %v669_v22, %v546_v31 }
 0x262   :  { %v882_v34 = vpop.f32.mrf.mxu0 }
 0x263   :  { %634 = vst.msk [vmem:[%s1294_s7 + $0x18] sm:$0xff] %vm53_vm0, %v618_v32  ;;  %v617_v35 = vmax.f32 %v547_v33, 0.0  ;;  %v562_v36 = vadd.f32 %v882_v34, %v669_v22 }
 0x264   :  { %v556_v37 = vpop.f32.mrf.mxu0 }
 0x265   :  { %633 = vst.msk [vmem:[%s1294_s7 + $0x10] sm:$0xff] %vm53_vm0, %v617_v35  ;;  %v620_v38 = vmax.f32 %v562_v36, 0.0  ;;  %v557_v39 = vadd.f32 %v669_v22, %v556_v37 }
 0x266   :  { %v885_v40 = vpop.f32.mrf.mxu0 }
 0x267   :  { %636 = vst.msk [vmem:[%s1294_s7 + $0x28] sm:$0xff] %vm53_vm0, %v620_v38  ;;  %v619_v41 = vmax.f32 %v557_v39, 0.0  ;;  %v572_v42 = vadd.f32 %v885_v40, %v669_v22 }
 0x268   :  { %v566_v43 = vpop.f32.mrf.mxu0 }
 0x269   :  { %635 = vst.msk [vmem:[%s1294_s7 + $0x20] sm:$0xff] %vm53_vm0, %v619_v41  ;;  %v622_v44 = vmax.f32 %v572_v42, 0.0  ;;  %v567_v45 = vadd.f32 %v669_v22, %v566_v43 }
 0x26a   :  { %v888_v46 = vpop.f32.mrf.mxu0 }
 0x26b   :  { %638 = vst.msk [vmem:[%s1294_s7 + $0x38] sm:$0xff] %vm53_vm0, %v622_v44  ;;  %v621_v47 = vmax.f32 %v567_v45, 0.0  ;;  %v582_v48 = vadd.f32 %v888_v46, %v669_v22 }
 0x26c   :  { %v576_v49 = vpop.f32.mrf.mxu0 }
 0x26d   :  { %637 = vst.msk [vmem:[%s1294_s7 + $0x30] sm:$0xff] %vm53_vm0, %v621_v47  ;;  %v624_v50 = vmax.f32 %v582_v48, 0.0  ;;  %v577_v51 = vadd.f32 %v669_v22, %v576_v49 }
 0x26e   :  { %v891_v52 = vpop.f32.mrf.mxu0 }
 0x26f   :  { %640 = vst.msk [vmem:[%s1294_s7 + $0x48] sm:$0xff] %vm53_vm0, %v624_v50  ;;  %v623_v53 = vmax.f32 %v577_v51, 0.0  ;;  %v592_v54 = vadd.f32 %v891_v52, %v669_v22 }
 0x270   :  { %v586_v55 = vpop.f32.mrf.mxu0 }
 0x271   :  { %639 = vst.msk [vmem:[%s1294_s7 + $0x40] sm:$0xff] %vm53_vm0, %v623_v53  ;;  %v626_v56 = vmax.f32 %v592_v54, 0.0  ;;  %v587_v57 = vadd.f32 %v669_v22, %v586_v55 }
 0x272   :  { %v894_v58 = vpop.f32.mrf.mxu0 }
 0x273   :  { %642 = vst.msk [vmem:[%s1294_s7 + $0x58] sm:$0xff] %vm53_vm0, %v626_v56  ;;  %v625_v59 = vmax.f32 %v587_v57, 0.0  ;;  %v602_v60 = vadd.f32 %v894_v58, %v669_v22 }
 0x274   :  { %v596_v61 = vpop.f32.mrf.mxu0 }
 0x275   :  { %641 = vst.msk [vmem:[%s1294_s7 + $0x50] sm:$0xff] %vm53_vm0, %v625_v59  ;;  %v628_v62 = vmax.f32 %v602_v60, 0.0  ;;  %v597_v63 = vadd.f32 %v669_v22, %v596_v61 }
 0x276   :  { %v897_v0 = vpop.f32.mrf.mxu1 }
 0x277   :  { %644 = vst.msk [vmem:[%s1294_s7 + $0x68] sm:$0xff] %vm53_vm0, %v628_v62  ;;  %v627_v1 = vmax.f32 %v597_v63, 0.0  ;;  %v612_v2 = vadd.f32 %v897_v0, %v669_v22 }
 0x278   :  { %v606_v3 = vpop.f32.mrf.mxu1 }
 0x279   :  { %643 = vst.msk [vmem:[%s1294_s7 + $0x60] sm:$0xff] %vm53_vm0, %v627_v1  ;;  %v630_v4 = vmax.f32 %v612_v2, 0.0  ;;  %v607_v5 = vadd.f32 %v669_v22, %v606_v3 }
 0x27b   :  { %646 = vst.msk [vmem:[%s1294_s7 + $0x78] sm:$0xff] %vm53_vm0, %v630_v4  ;;  %v629_v6 = vmax.f32 %v607_v5, 0.0 }
 0x27d   :  { %645 = vst.msk [vmem:[%s1294_s7 + $0x70] sm:$0xff] %vm53_vm0, %v629_v6 }

</bundles_post_ra>
